<compile_context>
chip_gen: v7x
topology: tpu7x:2x2x1
jax: 0.10.0
libtpu: 0.0.40
codegen_flags: <defaults>
</compile_context>

<pallas_src>
import functools
import math

import jax
import jax.numpy as jnp
from jax import lax
from jax.experimental import pallas as pl
from jax.experimental.pallas import tpu as pltpu


_VMEM_BUDGET = 36 * 1024 * 1024   # target working-set bound used for tile picking
_VMEM_LIMIT = 48 * 1024 * 1024    # scoped VMEM limit (safe on v5e/v6e 128 MiB, v7x 64 MiB)


def _round_up(x, m):
    return (x + m - 1) // m * m


def _rows_kernel(p_ref, z_ref, t_ref, a_ref, b_ref, u_ref, *,
                 num_classes, valid_cols):
    p = p_ref[...].astype(jnp.float32)
    z = z_ref[...].astype(jnp.float32)
    t = t_ref[...].astype(jnp.float32)

    # F.normalize(x, dim=1, eps=1e-12)  ==  x * rsqrt(max(||x||^2, 1e-24))
    inv_p = lax.rsqrt(jnp.maximum(jnp.sum(p * p, axis=1, keepdims=True), 1e-24))
    inv_z = lax.rsqrt(jnp.maximum(jnp.sum(z * z, axis=1, keepdims=True), 1e-24))

    # entr = -(t * log t).sum over the REAL class columns; torch zeroes NaN
    # ROW sums (one exact-zero prob -> 0*log0 NaNs the whole row) -> rev = 1.
    # The zero lane-padding columns are excluded so they don't inject NaN
    # into every row.
    xlogx = t * jnp.log(t)
    if valid_cols != t.shape[1]:
        col = lax.broadcasted_iota(jnp.int32, t.shape, 1)
        xlogx = jnp.where(col < valid_cols, xlogx, 0.0)
    entr = -jnp.sum(xlogx, axis=1, keepdims=True)
    log_nc = math.log(num_classes)
    inv_log_nc = (1.0 / log_nc) if log_nc != 0.0 else float("inf")  # nc==1 -> NaN like torch
    rev = 1.0 - entr * inv_log_nc
    rev = jnp.where(jnp.isnan(entr), 1.0, rev)

    a_ref[...] = (p * (inv_p * rev)).astype(jnp.bfloat16)
    b_ref[...] = (z * (inv_z * rev)).astype(jnp.bfloat16)

    # cosine_similarity eps: per-row clamp at sqrt(1e-8) == torch's product
    # clamp at 1e-8 for any non-degenerate (e.g. probability) target rows.
    inv_t = lax.rsqrt(jnp.maximum(jnp.sum(t * t, axis=1, keepdims=True), 1e-8))
    u_ref[...] = (t * inv_t).astype(jnp.bfloat16)


def _tiles_kernel(a_ref, b_ref, ui_ref, uj_ref, tot_ref, cnt_ref, *, t_i, t_j):
    i = pl.program_id(0)
    j = pl.program_id(1)

    @pl.when(j == 0)
    def _init():
        tot_ref[...] = jnp.zeros_like(tot_ref)
        cnt_ref[...] = jnp.zeros_like(cnt_ref)

    # Contract last dims of both operands: MXU gets natural layouts, no .T copy.
    dims = (((1,), (1,)), ((), ()))
    # == (-p_n @ z_n.T) * mask_similar_class1   (rev folded into the rows)
    neg_dot_m1 = -lax.dot_general(a_ref[...], b_ref[...], dims,
                                  preferred_element_type=jnp.float32)
    # == mask_similar_class2 (pairwise cosine similarity of target rows)
    m2 = lax.dot_general(ui_ref[...], uj_ref[...], dims,
                         preferred_element_type=jnp.float32)
    sel = neg_dot_m1 * m2

    def _accumulate(s):
        tot_ref[...] += jnp.sum(s, axis=0)[None, None, :]
        cnt_ref[...] += jnp.sum((s != 0.0).astype(jnp.float32), axis=0)[None, None, :]
        # TODO(synk): if a profile shows VALU saturation for small D, offload
        # these two axis-0 reductions to the MXU via a ones-matmul.

    row0 = i * t_i
    col0 = j * t_j
    touches_diag = jnp.logical_and(col0 < row0 + t_i, row0 < col0 + t_j)

    @pl.when(touches_diag)
    def _diag_tile():
        # mask_anchor_out = 1 - eye(N): only diagonal-crossing tiles pay for it.
        r = row0 + lax.broadcasted_iota(jnp.int32, sel.shape, 0)
        c = col0 + lax.broadcasted_iota(jnp.int32, sel.shape, 1)
        _accumulate(jnp.where(r == c, 0.0, sel))

    @pl.when(jnp.logical_not(touches_diag))
    def _off_diag_tile():
        _accumulate(sel)


def soft_sup_simsiam_loss_v17(p, z, targets, num_classes, *,
                              tile_i=None, tile_j=256):
    """Forward of SoftSupSimSiamLossV17.  p, z: (N, D) f32; targets: (N, C)."""
    n, d = p.shape
    c = targets.shape[1]

    # Lane-pad the feature / class axes to multiples of 128 so every vld/vst
    # and both MXU contractions are full-lane.  Zero columns are inert for
    # the norms, the dot products and (via the iota mask above) the entropy.
    d_pad = _round_up(max(d, 1), 128)
    c_pad = _round_up(max(c, 1), 128)
    if d_pad != d:
        p = jnp.pad(p, ((0, 0), (0, d_pad - d)))
        z = jnp.pad(z, ((0, 0), (0, d_pad - d)))
    if c_pad != c:
        targets = jnp.pad(targets, ((0, 0), (0, c_pad - c)))

    # ---- tile selection -----------------------------------------------------
    # Kernel 2's HBM traffic is dominated by re-fetching the b/uj (key) tiles
    # once per i (query) tile, so the i tile is the big one; t_j stays at 256
    # to bound the three (t_i, t_j) f32 intermediates and the key buffers.
    try:
        kind = jax.devices()[0].device_kind.lower()
    except Exception:  # pragma: no cover
        kind = ""
    n8 = _round_up(n, 8)
    if n8 <= 256:
        t_i = t_j = n8                      # single-tile fast path for small N
    else:
        t_j = int(tile_j)
        if tile_i is not None:
            t_i = max(t_j, _round_up(int(tile_i), t_j))
        else:
            # v6e roofline crossover (~650 flop/byte) wants t_i ~ 1024;
            # v7x (~310) and v5e (~240) are satisfied by 512.
            t_i = 1024 if "v6" in kind else 512

        def k2_vmem(ti):
            return (2 * ti * (d_pad + c_pad) * 2       # a, ui double buffers
                    + 2 * t_j * (d_pad + c_pad) * 2    # b, uj double buffers
                    + 3 * ti * t_j * 4)                # f32 intermediates

        while t_i > t_j and k2_vmem(t_i) > _VMEM_BUDGET:
            t_i //= 2
        # avoid paying more than half an i-tile of extra padded rows
        while t_i > t_j and _round_up(n, t_i) - _round_up(n, t_j) >= t_i // 2:
            t_i //= 2
        # v7x megacore: keep >= 2 i tiles so the "parallel" axis fills both TCs
        if "v5" not in kind and "v6" not in kind:
            while t_i > t_j and _round_up(n, t_i) // t_i < 2:
                t_i //= 2

    n_pad = _round_up(n, t_i)
    if n_pad != n:
        # Zero-padded rows are inert: their a/b/u rows come out exactly 0, so
        # they add 0 to both the masked sum and the nonzero count.
        pad = ((0, n_pad - n), (0, 0))
        p = jnp.pad(p, pad)
        z = jnp.pad(z, pad)
        targets = jnp.pad(targets, pad)

    # ---- kernel 1: per-row prologue (normalize + fold row scales, bf16) ----
    tr = min(512, t_i)                      # large row block: memory-bound pass
    while tr % 16 == 0 and tr * (2 * d_pad + c_pad) * 12 > _VMEM_BUDGET:
        tr //= 2                            # stays a multiple of 8 and divides n_pad
    a, b, u = pl.pallas_call(
        functools.partial(_rows_kernel, num_classes=num_classes, valid_cols=c),
        out_shape=(
            jax.ShapeDtypeStruct((n_pad, d_pad), jnp.bfloat16),
            jax.ShapeDtypeStruct((n_pad, d_pad), jnp.bfloat16),
            jax.ShapeDtypeStruct((n_pad, c_pad), jnp.bfloat16),
        ),
        grid=(n_pad // tr,),
        in_specs=[
            pl.BlockSpec((tr, d_pad), lambda i: (i, 0)),
            pl.BlockSpec((tr, d_pad), lambda i: (i, 0)),
            pl.BlockSpec((tr, c_pad), lambda i: (i, 0)),
        ],
        out_specs=(
            pl.BlockSpec((tr, d_pad), lambda i: (i, 0)),
            pl.BlockSpec((tr, d_pad), lambda i: (i, 0)),
            pl.BlockSpec((tr, c_pad), lambda i: (i, 0)),
        ),
        compiler_params=pltpu.CompilerParams(
            dimension_semantics=("parallel",),
            vmem_limit_bytes=_VMEM_LIMIT),
    )(p, z, targets)

    # ---- kernel 2: (i, j) tiled NxN product with per-i-tile partials --------
    n_gi = n_pad // t_i
    n_gj = n_pad // t_j
    flops = 2 * n_pad * n_pad * (d_pad + c_pad)
    bytes_accessed = (n_gi * n_pad * (d_pad + c_pad) * 2     # b/uj refetched per i tile
                      + n_pad * (d_pad + c_pad) * 2          # a/ui streamed once
                      + 2 * n_gi * t_j * 4)                  # partial outputs
    tot, cnt = pl.pallas_call(
        functools.partial(_tiles_kernel, t_i=t_i, t_j=t_j),
        out_shape=(
            jax.ShapeDtypeStruct((n_gi, 1, t_j), jnp.float32),
            jax.ShapeDtypeStruct((n_gi, 1, t_j), jnp.float32),
        ),
        grid=(n_gi, n_gj),
        in_specs=[
            pl.BlockSpec((t_i, d_pad), lambda i, j: (i, 0)),   # a rows (query tile)
            pl.BlockSpec((t_j, d_pad), lambda i, j: (j, 0)),   # b rows (key tile)
            pl.BlockSpec((t_i, c_pad), lambda i, j: (i, 0)),   # u rows (query tile)
            pl.BlockSpec((t_j, c_pad), lambda i, j: (j, 0)),   # u rows (key tile)
        ],
        out_specs=(
            pl.BlockSpec((1, 1, t_j), lambda i, j: (i, 0, 0)),
            pl.BlockSpec((1, 1, t_j), lambda i, j: (i, 0, 0)),
        ),
        compiler_params=pltpu.CompilerParams(
            dimension_semantics=("parallel", "arbitrary"),
            vmem_limit_bytes=_VMEM_LIMIT),
        cost_estimate=pl.CostEstimate(
            flops=int(flops), transcendentals=0,
            bytes_accessed=int(bytes_accessed)),
    )(a, b, u, u)

    # Tiny final reduction of the lane-dense partials in the wrapper.  The
    # nonzero count is summed exactly in int32 (a plain f32 sum loses integer
    # exactness once N^2 exceeds 2^24).
    total = jnp.sum(tot)
    count = jnp.sum(jnp.round(cnt).astype(jnp.int32))
    # count == 0 -> NaN, same as torch's mean over an empty selection.
    return total / count


if __name__ == "__main__":
    N, D, NUM_CLASSES = 8, 32, 4

    key = jax.random.PRNGKey(0)
    kp, kz, kt = jax.random.split(key, 3)
    p = jax.random.normal(kp, (N, D), dtype=jnp.float32)
    z = jax.random.normal(kz, (N, D), dtype=jnp.float32)
    # soft-label targets: valid probability rows over NUM_CLASSES classes
    targets = jax.nn.softmax(
        jax.random.normal(kt, (N, NUM_CLASSES), dtype=jnp.float32), axis=1)

    loss = soft_sup_simsiam_loss_v17(p, z, targets, NUM_CLASSES)
    jax.block_until_ready(loss)
    print("KERNEL_OK")
</pallas_src>

<mosaic_0001>
module attributes {stable_mosaic.version = 11 : i64} {
  func.func @_rows_kernel(%arg0: i32, %arg1: memref<8x128xf32, #tpu.memory_space<vmem>>, %arg2: memref<8x128xf32, #tpu.memory_space<vmem>>, %arg3: memref<8x128xf32, #tpu.memory_space<vmem>>, %arg4: memref<8x128xbf16, #tpu.memory_space<vmem>>, %arg5: memref<8x128xbf16, #tpu.memory_space<vmem>>, %arg6: memref<8x128xbf16, #tpu.memory_space<vmem>>) attributes {dimension_semantics = [#tpu.dimension_semantics<parallel>], iteration_bounds = array<i64: 1>, scalar_prefetch = 0 : i64, scratch_operands = 0 : i64, tpu.core_type = #tpu.core_type<tc>, window_params = [{transform_indices = @transform_0, window_bounds = array<i64: 8, 128>}, {transform_indices = @transform_1, window_bounds = array<i64: 8, 128>}, {transform_indices = @transform_2, window_bounds = array<i64: 8, 128>}, {transform_indices = @transform_3, window_bounds = array<i64: 8, 128>}, {transform_indices = @transform_4, window_bounds = array<i64: 8, 128>}, {transform_indices = @transform_5, window_bounds = array<i64: 8, 128>}]} {
    %c0 = arith.constant 0 : index
    %c0_0 = arith.constant 0 : index
    %0 = vector.load %arg1[%c0, %c0_0] : memref<8x128xf32, #tpu.memory_space<vmem>>, vector<8x128xf32>
    %c0_1 = arith.constant 0 : index
    %c0_2 = arith.constant 0 : index
    %1 = vector.load %arg2[%c0_1, %c0_2] : memref<8x128xf32, #tpu.memory_space<vmem>>, vector<8x128xf32>
    %c0_3 = arith.constant 0 : index
    %c0_4 = arith.constant 0 : index
    %2 = vector.load %arg3[%c0_3, %c0_4] : memref<8x128xf32, #tpu.memory_space<vmem>>, vector<8x128xf32>
    %3 = arith.mulf %0, %0 : vector<8x128xf32>
    %cst = arith.constant dense<0.000000e+00> : vector<8xf32>
    %4 = vector.multi_reduction <add>, %3, %cst [1] : vector<8x128xf32> to vector<8xf32>
    %5 = vector.shape_cast %4 : vector<8xf32> to vector<8x1xf32>
    %cst_5 = arith.constant 1.000000e-24 : f32
    %6 = vector.broadcast %cst_5 : f32 to vector<8x1xf32>
    %7 = arith.maximumf %5, %6 : vector<8x1xf32>
    %8 = math.rsqrt %7 : vector<8x1xf32>
    %9 = arith.mulf %1, %1 : vector<8x128xf32>
    %cst_6 = arith.constant dense<0.000000e+00> : vector<8xf32>
    %10 = vector.multi_reduction <add>, %9, %cst_6 [1] : vector<8x128xf32> to vector<8xf32>
    %11 = vector.shape_cast %10 : vector<8xf32> to vector<8x1xf32>
    %cst_7 = arith.constant 1.000000e-24 : f32
    %12 = vector.broadcast %cst_7 : f32 to vector<8x1xf32>
    %13 = arith.maximumf %11, %12 : vector<8x1xf32>
    %14 = math.rsqrt %13 : vector<8x1xf32>
    %15 = math.log %2 : vector<8x128xf32>
    %16 = arith.mulf %2, %15 : vector<8x128xf32>
    %17 = tpu.iota {dimensions = array<i32: 1>} : vector<8x128xi32>
    %c4_i32 = arith.constant 4 : i32
    %18 = vector.broadcast %c4_i32 : i32 to vector<8x128xi32>
    %19 = arith.cmpi slt, %17, %18 : vector<8x128xi32>
    %cst_8 = arith.constant 0.000000e+00 : f32
    %20 = vector.broadcast %cst_8 : f32 to vector<8x128xf32>
    %21 = arith.select %19, %16, %20 : vector<8x128xi1>, vector<8x128xf32>
    %cst_9 = arith.constant dense<0.000000e+00> : vector<8xf32>
    %22 = vector.multi_reduction <add>, %21, %cst_9 [1] : vector<8x128xf32> to vector<8xf32>
    %23 = vector.shape_cast %22 : vector<8xf32> to vector<8x1xf32>
    %cst_10 = arith.constant 0.000000e+00 : f32
    %24 = vector.broadcast %cst_10 : f32 to vector<8x1xf32>
    %25 = arith.subf %24, %23 : vector<8x1xf32>
    %cst_11 = arith.constant 0.72134751 : f32
    %26 = vector.broadcast %cst_11 : f32 to vector<8x1xf32>
    %27 = arith.mulf %25, %26 : vector<8x1xf32>
    %cst_12 = arith.constant 1.000000e+00 : f32
    %28 = vector.broadcast %cst_12 : f32 to vector<8x1xf32>
    %29 = arith.subf %28, %27 : vector<8x1xf32>
    %30 = arith.cmpf one, %25, %25 : vector<8x1xf32>
    %cst_13 = arith.constant 1.000000e+00 : f32
    %31 = vector.broadcast %cst_13 : f32 to vector<8x1xf32>
    %32 = arith.select %30, %31, %29 : vector<8x1xi1>, vector<8x1xf32>
    %33 = arith.mulf %8, %32 : vector<8x1xf32>
    %34 = vector.broadcast %33 : vector<8x1xf32> to vector<8x128xf32>
    %35 = arith.mulf %0, %34 : vector<8x128xf32>
    %36 = arith.truncf %35 : vector<8x128xf32> to vector<8x128xbf16>
    %c0_14 = arith.constant 0 : index
    %c0_15 = arith.constant 0 : index
    %37 = vector.load %arg4[%c0_14, %c0_15] : memref<8x128xbf16, #tpu.memory_space<vmem>>, vector<8x128xbf16>
    tpu.vector_store %arg4[%c0_14, %c0_15], %36 {strides = array<i32>} : memref<8x128xbf16, #tpu.memory_space<vmem>>, vector<8x128xbf16>,
    %38 = arith.mulf %14, %32 : vector<8x1xf32>
    %39 = vector.broadcast %38 : vector<8x1xf32> to vector<8x128xf32>
    %40 = arith.mulf %1, %39 : vector<8x128xf32>
    %41 = arith.truncf %40 : vector<8x128xf32> to vector<8x128xbf16>
    %c0_16 = arith.constant 0 : index
    %c0_17 = arith.constant 0 : index
    %42 = vector.load %arg5[%c0_16, %c0_17] : memref<8x128xbf16, #tpu.memory_space<vmem>>, vector<8x128xbf16>
    tpu.vector_store %arg5[%c0_16, %c0_17], %41 {strides = array<i32>} : memref<8x128xbf16, #tpu.memory_space<vmem>>, vector<8x128xbf16>,
    %43 = arith.mulf %2, %2 : vector<8x128xf32>
    %cst_18 = arith.constant dense<0.000000e+00> : vector<8xf32>
    %44 = vector.multi_reduction <add>, %43, %cst_18 [1] : vector<8x128xf32> to vector<8xf32>
    %45 = vector.shape_cast %44 : vector<8xf32> to vector<8x1xf32>
    %cst_19 = arith.constant 9.99999993E-9 : f32
    %46 = vector.broadcast %cst_19 : f32 to vector<8x1xf32>
    %47 = arith.maximumf %45, %46 : vector<8x1xf32>
    %48 = math.rsqrt %47 : vector<8x1xf32>
    %49 = vector.broadcast %48 : vector<8x1xf32> to vector<8x128xf32>
    %50 = arith.mulf %2, %49 : vector<8x128xf32>
    %51 = arith.truncf %50 : vector<8x128xf32> to vector<8x128xbf16>
    %c0_20 = arith.constant 0 : index
    %c0_21 = arith.constant 0 : index
    %52 = vector.load %arg6[%c0_20, %c0_21] : memref<8x128xbf16, #tpu.memory_space<vmem>>, vector<8x128xbf16>
    tpu.vector_store %arg6[%c0_20, %c0_21], %51 {strides = array<i32>} : memref<8x128xbf16, #tpu.memory_space<vmem>>, vector<8x128xbf16>,
    return
  }
  func.func @transform_0(%arg0: i32) -> (i32, i32) {
    %c0_i32 = arith.constant 0 : i32
    %c0_i32_0 = arith.constant 0 : i32
    return %arg0, %c0_i32 : i32, i32
  }
  func.func @transform_1(%arg0: i32) -> (i32, i32) {
    %c0_i32 = arith.constant 0 : i32
    %c0_i32_0 = arith.constant 0 : i32
    return %arg0, %c0_i32 : i32, i32
  }
  func.func @transform_2(%arg0: i32) -> (i32, i32) {
    %c0_i32 = arith.constant 0 : i32
    %c0_i32_0 = arith.constant 0 : i32
    return %arg0, %c0_i32 : i32, i32
  }
  func.func @transform_3(%arg0: i32) -> (i32, i32) {
    %c0_i32 = arith.constant 0 : i32
    %c0_i32_0 = arith.constant 0 : i32
    return %arg0, %c0_i32 : i32, i32
  }
  func.func @transform_4(%arg0: i32) -> (i32, i32) {
    %c0_i32 = arith.constant 0 : i32
    %c0_i32_0 = arith.constant 0 : i32
    return %arg0, %c0_i32 : i32, i32
  }
  func.func @transform_5(%arg0: i32) -> (i32, i32) {
    %c0_i32 = arith.constant 0 : i32
    %c0_i32_0 = arith.constant 0 : i32
    return %arg0, %c0_i32 : i32, i32
  }
}

</mosaic_0001>

<bundles_post_ra>
// kernel: tpu_custom_call.1
= control target key start
LH: loop header
LB: loop body
LE: loop exit
PB: predicated region body
PF: predicated region fallthrough
CT: control target
= control target key end

     0   :  { %11 = vsyncpa [#allocation3], 0  ;;  %s416_s0 = inlined_call_operand.hbm [shape: f32[8,128], index: 0, kind: input, shape index: {}]   ;;  %s417_s1 = inlined_call_operand.hbm [shape: f32[8,128], index: 1, kind: input, shape index: {}]   ;;  %s418_s2 = inlined_call_operand.hbm [shape: f32[8,128], index: 2, kind: input, shape index: {}]   ;;  %s419_s3 = inlined_call_operand.hbm [shape: bf16[8,128], index: 3, kind: output, shape index: {0}]   ;;  %s420_s4 = inlined_call_operand.hbm [shape: bf16[8,128], index: 4, kind: output, shape index: {1}]   ;;  %s421_s5 = inlined_call_operand.hbm [shape: bf16[8,128], index: 5, kind: output, shape index: {2}]  }
   0x1   :  { %12 = vsyncpa [#allocation6], 0 }
   0x2   :  { %13 = vsyncpa [#allocation4], 0 }
   0x3   :  { %14 = vsyncpa [#allocation10], 0  ;;  %s294_s18 = smov [#allocation5]   ;;  %s295_s20 = smov [#allocation2]  }
   0x4   :  { %s31_s19 = sshll.u32 %s294_s18, 4  ;;  %s21_s21 = sshll.u32 %s295_s20, 4  ;;  %s32_s19 = int_to_ptr.vmem [resolvable:$true] %s31_s19  ;;  %s22_s21 = int_to_ptr.vmem [resolvable:$true] %s21_s21 }
   0x5   :  { %s154_s24 = scalar_lea.hbm %s417_s1, 128 }
   0x6   :  { %p155_p0 = scmp.ne.s32.totalorder %s417_s1, %s154_s24  ;;  %p158_p1 = scmp.lt.u32.totalorder %s154_s24, %s417_s1 }
   0x8   :  { %p160_p2 = pnand %p158_p1, %p155_p0 }
   0xa   :  { %163 = shalt.err (!%p160_p2)
}
   0xb   :  { %s164_s29 = scalar_lea.vmem %s32_s19, 128  ;;  %p169_p4 = scmp.lt.s32.totalorder %s32_s19, %s32_s19 }
   0xc   :  { %p165_p3 = scmp.ne.s32.totalorder %s32_s19, %s164_s29  ;;  %p170_p5 = scmp.lt.s32.totalorder %s164_s29, %s164_s29 }
   0xe   :  { %p171_p6 = por %p170_p5, %p169_p4 }
  0x10   :  { %p172_p7 = pnand %p171_p6, %p165_p3 }
  0x12   :  { %175 = shalt.err (!%p172_p7)
}
  0x13   :  { %34 = dma.hbm_to_vmem [thread:$0]  %s417_s1, 128, %s32_s19, [#allocation6]  }
  0x14   :  { %s176_s9 = scalar_lea.hbm %s416_s0, 128 }
  0x15   :  { %p177_p8 = scmp.ne.s32.totalorder %s416_s0, %s176_s9  ;;  %p180_p9 = scmp.lt.u32.totalorder %s176_s9, %s416_s0 }
  0x17   :  { %p182_p10 = pnand %p180_p9, %p177_p8 }
  0x19   :  { %185 = shalt.err (!%p182_p10)
}
  0x1a   :  { %s186_s14 = scalar_lea.vmem %s22_s21, 128  ;;  %p191_p12 = scmp.lt.s32.totalorder %s22_s21, %s22_s21 }
  0x1b   :  { %p187_p11 = scmp.ne.s32.totalorder %s22_s21, %s186_s14  ;;  %p192_p13 = scmp.lt.s32.totalorder %s186_s14, %s186_s14 }
  0x1d   :  { %p193_p0 = por %p192_p13, %p191_p12 }
  0x1f   :  { %p194_p1 = pnand %p193_p0, %p187_p11 }
  0x21   :  { %197 = shalt.err (!%p194_p1)
}
  0x22   :  { %24 = dma.hbm_to_vmem [thread:$0]  %s416_s0, 128, %s22_s21, [#allocation3]  }
  0x23   :  { %s296_s16 = smov [#allocation7]   ;;  %s198_s20 = scalar_lea.hbm %s418_s2, 128 }
  0x24   :  { %s41_s17 = sshll.u32 %s296_s16, 4  ;;  %p199_p2 = scmp.ne.s32.totalorder %s418_s2, %s198_s20  ;;  %s42_s17 = int_to_ptr.vmem [resolvable:$true] %s41_s17 }
  0x25   :  { %p202_p3 = scmp.lt.u32.totalorder %s198_s20, %s418_s2 }
  0x27   :  { %p204_p4 = pnand %p202_p3, %p199_p2 }
  0x29   :  { %207 = shalt.err (!%p204_p4)
}
  0x2a   :  { %s208_s26 = scalar_lea.vmem %s42_s17, 128  ;;  %p213_p6 = scmp.lt.s32.totalorder %s42_s17, %s42_s17 }
  0x2b   :  { %p209_p5 = scmp.ne.s32.totalorder %s42_s17, %s208_s26  ;;  %p214_p7 = scmp.lt.s32.totalorder %s208_s26, %s208_s26 }
  0x2d   :  { %p215_p8 = por %p214_p7, %p213_p6 }
  0x2f   :  { %p216_p9 = pnand %p215_p8, %p209_p5 }
  0x31   :  { %219 = shalt.err (!%p216_p9)
}
  0x32   :  { %44 = dma.hbm_to_vmem [thread:$0]  %s418_s2, 128, %s42_s17, [#allocation6]  }
  0x33   :  { %286 = dma.done.wait [#allocation3], 128  }
  0x34   :  { %287 = vsyncadd [#allocation3], 4294967168 }
  0x35   :  { %288 = dma.done.wait [#allocation6], 256  }
  0x36   :  { %289 = vsyncadd [#allocation6], 4294967040  ;;  %v55_v0 = vld [vmem:[#allocation5] sm:$0xff]  ;;  %v54_v1 = vld [vmem:[#allocation2] sm:$0xff]  ;;  %v70_v6 = vlaneseq  ;;  %s297_s2 = smov [#allocation9]   ;;  %s298_s28 = smov [#allocation8]  }
  0x37   :  { %v56_v2 = vld [vmem:[#allocation7] sm:$0xff]  ;;  %v62_v3 = vmul.f32 %v55_v0, %v55_v0  ;;  %v57_v5 = vmul.f32 %v54_v1, %v54_v1  ;;  %s113_s27 = sshll.u32 %s297_s2, 4  ;;  %s103_s29 = sshll.u32 %s298_s28, 4  ;;  %s114_s27 = int_to_ptr.vmem [resolvable:$true] %s113_s27  ;;  %s366_s29 = int_to_ptr.vmem [resolvable:$true] %s103_s29 }
  0x38   :  { %v89_v4 = vmul.f32 %v56_v2, %v56_v2  ;;  %146 = vlog2.f32 %v56_v2  ;;  %v71_v7 = vand.u32 127, %v70_v6  ;;  %s299_s30 = smov [#allocation11]   ;;  %s220_s7 = scalar_lea.vmem %s114_s27, 64 }
  0x39   :  { %63 = vadd.xlane.f32.xlu0 %v62_v3  ;;  %s123_s6 = sshll.u32 %s299_s30, 4  ;;  %p221_p10 = scmp.ne.s32.totalorder %s114_s27, %s220_s7  ;;  %s368_s6 = int_to_ptr.vmem [resolvable:$true] %s123_s6 }
  0x3a   :  { %90 = vadd.xlane.f32.xlu1 %v89_v4  ;;  %vm72_vm0 = vcmp.lt.s32.totalorder %v71_v7, 4  ;;  %p225_p11 = scmp.lt.s32.totalorder %s114_s27, %s114_s27  ;;  %p226_p12 = scmp.lt.s32.totalorder %s220_s7, %s220_s7 }
  0x3c   :  { %p227_p13 = por %p226_p12, %p225_p11 }
  0x3d   :  { %58 = vadd.xlane.f32.xlu0 %v57_v5 }
  0x3e   :  { %p228_p0 = pnand %p227_p13, %p221_p10 }
  0x42   :  { %v147_v8 = vpop.eup %146 }
  0x43   :  { %v68_v9 = vmul.f32 0.6931472, %v147_v8 }
  0x45   :  { %v69_v10 = vmul.f32 %v68_v9, %v56_v2 }
  0x47   :  { %v73_v11 = vsel %vm72_vm0, %v69_v10, 0.0 }
  0x48   :  { %74 = vadd.xlane.f32.xlu1 %v73_v11 }
  0xc6   :  { %v64_v12 = vpop.xlane.xlu0 %63 }
  0xc7   :  { %v91_v13 = vpop.xlane.xlu1 %90  ;;  %v65_v17 = vmax.f32 %v64_v12, 1e-24 }
  0xc8   :  { %v92_v14 = vmax.f32 %v91_v13, 1e-08 }
  0xca   :  { %v59_v15 = vpop.xlane.xlu0 %58  ;;  %148 = vrsqrt.f32 %v92_v14 }
  0xcb   :  { %v60_v16 = vmax.f32 %v59_v15, 1e-24 }
  0xcd   :  { %150 = vrsqrt.f32 %v60_v16 }
  0xce   :  { %152 = vrsqrt.f32 %v65_v17 }
  0xd4   :  { %v149_v18 = vpop.eup %148 }
  0xd5   :  { %v75_v19 = vpop.xlane.xlu1 %74  ;;  %v94_v21 = vmul.f32 %v149_v18, %v56_v2 }
  0xd6   :  { %v76_v20 = vsub.f32 0.0, %v75_v19 }
  0xd7   :  { %v95_v23 = vpack.c.bf16 %v94_v21, %v94_v21  ;;  %v151_v24 = vpop.eup %150 }
  0xd8   :  { %v77_v22 = vmul.f32 0.7213475, %v76_v20  ;;  %vm79_vm1 = vcmp.ne.f32.partialorder %v76_v20, %v76_v20  ;;  %v153_v26 = vpop.eup %152 }
  0xd9   :  { %96 = vst [vmem:[#allocation11] sm:$0xf] %v95_v23 }
  0xda   :  { %v78_v25 = vsub.f32 1.0, %v77_v22 }
  0xdc   :  { %v80_v27 = vsel %vm79_vm1, 1.0, %v78_v25 }
  0xdd   :  { %v81_v28 = vmul.f32 %v151_v24, %v80_v27  ;;  %v85_v29 = vmul.f32 %v153_v26, %v80_v27 }
  0xdf   :  { %v86_v30 = vmul.f32 %v85_v29, %v55_v0  ;;  %v82_v31 = vmul.f32 %v81_v28, %v54_v1 }
  0xe1   :  { %v87_v32 = vpack.c.bf16 %v86_v30, %v86_v30  ;;  %v83_v33 = vpack.c.bf16 %v82_v31, %v82_v31 }
  0xe3   :  { %88 = vst [vmem:[#allocation9] sm:$0xf] %v87_v32  ;;  %84 = vst [vmem:[#allocation8] sm:$0xf] %v83_v33 }
  0xe4   :  { %231 = shalt.err (!%p228_p0)
}
  0xe5   :  { %s232_s10 = scalar_lea.hbm %s420_s4, 64 }
  0xe6   :  { %p233_p1 = scmp.ne.s32.totalorder %s420_s4, %s232_s10  ;;  %p236_p2 = scmp.lt.u32.totalorder %s232_s10, %s420_s4 }
  0xe8   :  { %p238_p3 = pnand %p236_p2, %p233_p1 }
  0xea   :  { %241 = shalt.err (!%p238_p3)
}
  0xeb   :  { %116 = dma.vmem_to_hbm [thread:$0]  %s114_s27, 64, %s420_s4, [#allocation10]  }
  0xec   :  { %s242_s16 = scalar_lea.vmem %s366_s29, 64  ;;  %p247_p5 = scmp.lt.s32.totalorder %s366_s29, %s366_s29 }
  0xed   :  { %p243_p4 = scmp.ne.s32.totalorder %s366_s29, %s242_s16  ;;  %p248_p6 = scmp.lt.s32.totalorder %s242_s16, %s242_s16 }
  0xef   :  { %p249_p7 = por %p248_p6, %p247_p5 }
  0xf1   :  { %p250_p8 = pnand %p249_p7, %p243_p4 }
  0xf3   :  { %253 = shalt.err (!%p250_p8)
}
  0xf4   :  { %s254_s19 = scalar_lea.hbm %s419_s3, 64 }
  0xf5   :  { %p255_p9 = scmp.ne.s32.totalorder %s419_s3, %s254_s19  ;;  %p258_p10 = scmp.lt.u32.totalorder %s254_s19, %s419_s3 }
  0xf7   :  { %p260_p11 = pnand %p258_p10, %p255_p9 }
  0xf9   :  { %263 = shalt.err (!%p260_p11)
}
  0xfa   :  { %106 = dma.vmem_to_hbm [thread:$0]  %s366_s29, 64, %s419_s3, [#allocation4]  }
  0xfb   :  { %s264_s26 = scalar_lea.vmem %s368_s6, 64  ;;  %p269_p13 = scmp.lt.s32.totalorder %s368_s6, %s368_s6 }
  0xfc   :  { %p265_p12 = scmp.ne.s32.totalorder %s368_s6, %s264_s26  ;;  %p270_p0 = scmp.lt.s32.totalorder %s264_s26, %s264_s26 }
  0xfe   :  { %p271_p1 = por %p270_p0, %p269_p13 }
 0x100   :  { %p272_p2 = pnand %p271_p1, %p265_p12 }
 0x102   :  { %275 = shalt.err (!%p272_p2)
}
 0x103   :  { %s276_s2 = scalar_lea.hbm %s421_s5, 64 }
 0x104   :  { %p277_p3 = scmp.ne.s32.totalorder %s421_s5, %s276_s2  ;;  %p280_p4 = scmp.lt.u32.totalorder %s276_s2, %s421_s5 }
 0x106   :  { %p282_p5 = pnand %p280_p4, %p277_p3 }
 0x108   :  { %285 = shalt.err (!%p282_p5)
}
 0x109   :  { %126 = dma.vmem_to_hbm [thread:$0]  %s368_s6, 64, %s421_s5, [#allocation10]  }
 0x10a   :  { %290 = dma.done.wait [#allocation4], 64  }
 0x10b   :  { %291 = vsyncadd [#allocation4], 4294967232 }
 0x10c   :  { %292 = dma.done.wait [#allocation10], 128  }
 0x10d   :  { %293 = vsyncadd [#allocation10], 4294967168 }
 0x10e   :  { %136 = vsyncpa [#allocation3], 1 }
 0x10f   :  { %137 = vsyncpa [#allocation6], 1 }
 0x110   :  { %138 = vsyncpa [#allocation4], 1 }
 0x111   :  { %139 = vsyncpa [#allocation10], 1 }

</bundles_post_ra>
